<compile_context>
chip_gen: v7x
topology: tpu7x:2x2x1
jax: 0.10.0
libtpu: 0.0.40
codegen_flags: <defaults>
</compile_context>

<pallas_src>
import functools
import math

import jax
import jax.numpy as jnp
from jax import lax
from jax.experimental import pallas as pl
from jax.experimental.pallas import tpu as pltpu

BN_EPS = 1e-5


def _vmem_capacity_bytes():
    try:
        return int(pltpu.get_tpu_info().vmem_capacity_bytes)
    except Exception:
        return 64 * 1024 * 1024  # conservative fallback (v7x per-core VMEM)


def _plan_tiles(N, Cin, Cout, HW, x_isz, out_isz, vmem_limit):
    """Pick (NB, TL): batch block and lane tile, sized from the VMEM budget."""
    budget = int(vmem_limit * 0.70)          # headroom for accumulators / compiler scratch
    row_bytes = Cin * x_isz + Cout * out_isz  # bytes per lane column (input + output)

    def step_bytes(nb, tl):
        # double-buffered input + output tiles of the streaming pass (worst case of the two)
        return 2 * nb * tl * row_bytes

    # Lane tile: largest multiple-of-128 divisor of HW that fits the budget; soft-cap the
    # per-step x bytes at ~8 MiB for pipelining granularity.
    if HW % 128 == 0:
        tl_cap = max(128, budget // (2 * row_bytes))
        tl_cap = min(tl_cap, max(128, (8 << 20) // max(1, Cin * x_isz)))
        if HW <= tl_cap:
            TL = HW
        else:
            TL = 128
            for t in range(256, min(HW, tl_cap) + 1, 128):
                if HW % t == 0:
                    TL = t
    else:
        # TODO(synk): HW not a multiple of 128 -> full-extent lane tile (no masked tail tile).
        TL = HW

    # Batch block: largest divisor of N that fits the budget (amortizes per-grid-step
    # overhead when Cin*TL alone is small).
    NB = 1
    for d in sorted((d for d in range(1, N + 1) if N % d == 0), reverse=True):
        if step_bytes(d, TL) <= budget and d * Cin * TL * x_isz <= (8 << 20):
            NB = d
            break
    return NB, TL, step_bytes(NB, TL)


def _stats_kernel(x_ref, sum_ref, xxt_ref, *, nb):
    # x_ref: (NB, Cin, TL) channels-leading tile (native dtype, no f32 up-cast).
    # sum_ref: (Cin, 1), xxt_ref: (Cin, Cin) -- per-core resident f32 accumulators.
    @pl.when((pl.program_id(1) == 0) & (pl.program_id(2) == 0))
    def _():
        sum_ref[...] = jnp.zeros_like(sum_ref)
        xxt_ref[...] = jnp.zeros_like(xxt_ref)

    for i in range(nb):                                   # static unroll over the batch block
        x = x_ref[i]                                      # (Cin, TL)
        ones = jnp.ones((x.shape[1], 1), x.dtype)
        # Per-channel sum on the MXU (keeps the cross-lane reduce off the XLU slot),
        # f32 accumulation via preferred_element_type.
        sum_ref[...] += lax.dot_general(
            x, ones, (((1,), (0,)), ((), ())), preferred_element_type=jnp.float32)
        # X @ X^T contracted over the lane (spatial) axis, f32 MXU accumulation.
        xxt_ref[...] += lax.dot_general(
            x, x, (((1,), (1,)), ((), ())), preferred_element_type=jnp.float32)


def _apply_kernel(wf_ref, bf_ref, x_ref, o_ref, *, nb):
    # Fully folded streaming pass: out = Wf @ x + bf  (BN_prev -> conv -> BN_next).
    w = wf_ref[...]                                       # (Cout, Cin), input-native precision
    b = bf_ref[...]                                       # (Cout, 1), f32
    for i in range(nb):                                   # static unroll over the batch block
        y = lax.dot_general(
            w, x_ref[i], (((1,), (0,)), ((), ())), preferred_element_type=jnp.float32)
        o_ref[i] = (y + b).astype(o_ref.dtype)            # lane-dense (Cout, TL) store


def task_conv2d(x_nchw, weight, bias, gamma_prev, beta_prev, gamma_next, beta_next):
    """x_nchw: (N, Cin, H, W); weight: (Cout, Cin, 1, 1); bias: (Cout,)."""
    # TODO(synk): only the module's default conv config (kernel_size=1, stride=1,
    # padding=0, dilation=1, groups=1) is implemented here.
    N, Cin, H, W = x_nchw.shape
    Cout = weight.shape[0]
    HW = H * W
    M = N * HW

    out_dtype = x_nchw.dtype
    x3 = x_nchw.reshape(N, Cin, HW)          # channels-leading view: reshape only, no transpose
    x_isz = jnp.dtype(x3.dtype).itemsize
    out_isz = jnp.dtype(out_dtype).itemsize

    capacity = _vmem_capacity_bytes()
    vmem_limit = min(capacity // 2, 96 * 1024 * 1024)   # ~64 MiB on 128-MiB parts, 32 MiB on v7x
    NB, TL, need = _plan_tiles(N, Cin, Cout, HW, x_isz, out_isz, vmem_limit)
    vmem_limit = int(min(capacity, max(vmem_limit, need + (4 << 20))))

    total_nb = N // NB
    n_lane = HW // TL

    # Megacore split of the stats pass: per-core partial accumulators (summed below),
    # so the leading "parallel" axis can be sharded across TensorCores on v7x.
    if n_lane % 2 == 0 and n_lane >= 2:
        n_cores, nb_c, nl_c = 2, total_nb, n_lane // 2
        x_stats_map = lambda c, n, l: (n, 0, c * nl_c + l)
    elif total_nb % 2 == 0 and total_nb >= 2:
        n_cores, nb_c, nl_c = 2, total_nb // 2, n_lane
        x_stats_map = lambda c, n, l: (c * nb_c + n, 0, l)
    else:
        n_cores, nb_c, nl_c = 1, total_nb, n_lane
        x_stats_map = lambda c, n, l: (n, 0, l)

    # ---- Pass 1: per-channel sum and X @ X^T over all N*H*W positions ----------------
    psum, pxxt = pl.pallas_call(
        functools.partial(_stats_kernel, nb=NB),
        out_shape=(jax.ShapeDtypeStruct((n_cores, Cin, 1), jnp.float32),
                   jax.ShapeDtypeStruct((n_cores, Cin, Cin), jnp.float32)),
        grid=(n_cores, nb_c, nl_c),
        in_specs=[pl.BlockSpec((NB, Cin, TL), x_stats_map)],
        out_specs=(pl.BlockSpec((None, Cin, 1), lambda c, n, l: (c, 0, 0)),
                   pl.BlockSpec((None, Cin, Cin), lambda c, n, l: (c, 0, 0))),
        compiler_params=pltpu.CompilerParams(
            dimension_semantics=("parallel", "arbitrary", "arbitrary"),
            vmem_limit_bytes=vmem_limit),
    )(x3)
    sum_x = jnp.sum(psum, axis=0)            # (Cin, 1)
    xxt = jnp.sum(pxxt, axis=0)              # (Cin, Cin)

    # ---- Fold BN_prev -> conv -> BN_next into one weight + bias (tiny channel math) --
    w2d = weight.reshape(Cout, Cin).astype(jnp.float32)
    bias = bias.astype(jnp.float32)
    gamma_prev = gamma_prev.astype(jnp.float32)
    beta_prev = beta_prev.astype(jnp.float32)
    gamma_next = gamma_next.astype(jnp.float32)
    beta_next = beta_next.astype(jnp.float32)

    mean_x = sum_x[:, 0] / M                                         # (Cin,)
    # Clamp: E[x^2]-E[x]^2 can go slightly negative from f32 rounding.
    var_x = jnp.maximum(jnp.diagonal(xxt) / M - mean_x**2, 0.0)      # (Cin,) biased
    s = gamma_prev * lax.rsqrt(var_x + BN_EPS)                       # (Cin,)
    t = beta_prev - mean_x * s                                       # (Cin,)

    # Batch statistics of y = conv(bn_prev(x)), derived analytically (exact):
    mean_y = w2d @ (mean_x * s + t) + bias                           # (Cout,)
    cov_x = xxt / M - jnp.outer(mean_x, mean_x)                      # (Cin, Cin)
    ws = w2d * s[None, :]                                            # (Cout, Cin)
    var_y = jnp.maximum(jnp.einsum("oi,ij,oj->o", ws, cov_x, ws), 0.0)  # (Cout,) biased
    scale_y = gamma_next * lax.rsqrt(var_y + BN_EPS)                 # (Cout,)

    wf = ws * scale_y[:, None]                                       # (Cout, Cin)
    bf = ((w2d @ t + bias - mean_y) * scale_y + beta_next).reshape(Cout, 1)
    # Feed the matmul in the input's native precision (bf16 x bf16 -> f32 is MXU-native).
    wf_k = wf.astype(jnp.bfloat16) if x3.dtype == jnp.bfloat16 else wf

    # ---- Pass 2: streaming  out = Wf @ x + bf  (lane-dense stores, megacore parallel) --
    # TODO(synk): optional single-kernel fast path (x resident in VMEM) and Buffered(3)
    # pipelining were not added to keep the lowering path identical to the validated one.
    out3 = pl.pallas_call(
        functools.partial(_apply_kernel, nb=NB),
        out_shape=jax.ShapeDtypeStruct((N, Cout, HW), out_dtype),
        grid=(total_nb, n_lane),
        in_specs=[pl.BlockSpec((Cout, Cin), lambda n, l: (0, 0)),
                  pl.BlockSpec((Cout, 1), lambda n, l: (0, 0)),
                  pl.BlockSpec((NB, Cin, TL), lambda n, l: (n, 0, l))],
        out_specs=pl.BlockSpec((NB, Cout, TL), lambda n, l: (n, 0, l)),
        compiler_params=pltpu.CompilerParams(
            dimension_semantics=("parallel", "parallel"),
            vmem_limit_bytes=vmem_limit),
    )(wf_k, bf, x3)

    return out3.reshape(N, Cout, H, W)


def _reference(x_nchw, weight, bias, gamma_prev, beta_prev, gamma_next, beta_next):
    """Pure-JAX reference of the same forward pass (training-mode BN)."""
    x = x_nchw.astype(jnp.float32)
    mean = jnp.mean(x, axis=(0, 2, 3), keepdims=True)
    var = jnp.mean((x - mean) ** 2, axis=(0, 2, 3), keepdims=True)
    x = (x - mean) / jnp.sqrt(var + BN_EPS)
    x = x * gamma_prev.reshape(1, -1, 1, 1) + beta_prev.reshape(1, -1, 1, 1)

    w2d = weight.reshape(weight.shape[0], weight.shape[1])           # (Cout, Cin)
    y = jnp.einsum("nchw,oc->nohw", x, w2d) + bias.reshape(1, -1, 1, 1)

    mean2 = jnp.mean(y, axis=(0, 2, 3), keepdims=True)
    var2 = jnp.mean((y - mean2) ** 2, axis=(0, 2, 3), keepdims=True)
    y = (y - mean2) / jnp.sqrt(var2 + BN_EPS)
    y = y * gamma_next.reshape(1, -1, 1, 1) + beta_next.reshape(1, -1, 1, 1)
    return y


if __name__ == "__main__":
    # Module config: add_bn_prev=True, add_bn_next=True, kernel_size=1 (defaults).
    N, Cin, H, W = 2, 4, 16, 16
    Cout = 8

    key = jax.random.PRNGKey(0)
    kx, kw, kb = jax.random.split(key, 3)

    x = jax.random.normal(kx, (N, Cin, H, W), dtype=jnp.float32)

    # Deterministic Conv2d-style init (uniform in +/- 1/sqrt(fan_in)).
    fan_in = Cin * 1 * 1
    bound = 1.0 / math.sqrt(fan_in)
    weight = jax.random.uniform(kw, (Cout, Cin, 1, 1), minval=-bound, maxval=bound,
                                dtype=jnp.float32)
    bias = jax.random.uniform(kb, (Cout,), minval=-bound, maxval=bound,
                              dtype=jnp.float32)

    # BatchNorm params as in __init__: weight.fill_(1), bias.zero_().
    gamma_prev = jnp.ones((Cin,), jnp.float32)
    beta_prev = jnp.zeros((Cin,), jnp.float32)
    gamma_next = jnp.ones((Cout,), jnp.float32)
    beta_next = jnp.zeros((Cout,), jnp.float32)

    out = task_conv2d(x, weight, bias, gamma_prev, beta_prev, gamma_next, beta_next)
    out = jax.block_until_ready(out)

    ref = _reference(x, weight, bias, gamma_prev, beta_prev, gamma_next, beta_next)
    assert out.shape == (N, Cout, H, W)
    assert jnp.allclose(out, ref, atol=2e-4, rtol=2e-4), "mismatch vs reference"

    print("KERNEL_OK")
</pallas_src>

<mosaic_0001>
module attributes {stable_mosaic.version = 11 : i64} {
  func.func @_stats_kernel(%arg0: i32, %arg1: i32, %arg2: i32, %arg3: memref<2x4x256xf32, #tpu.memory_space<vmem>>, %arg4: memref<1x4x1xf32, #tpu.memory_space<vmem>>, %arg5: memref<1x4x4xf32, #tpu.memory_space<vmem>>) attributes {dimension_semantics = [#tpu.dimension_semantics<parallel>, #tpu.dimension_semantics<arbitrary>, #tpu.dimension_semantics<arbitrary>], iteration_bounds = array<i64: 1, 1, 1>, scalar_prefetch = 0 : i64, scratch_operands = 0 : i64, tpu.core_type = #tpu.core_type<tc>, window_params = [{transform_indices = @transform_0, window_bounds = array<i64: 2, 4, 256>}, {transform_indices = @transform_1, window_bounds = array<i64: 1, 4, 1>}, {transform_indices = @transform_2, window_bounds = array<i64: 1, 4, 4>}]} {
    %c0_i32 = arith.constant 0 : i32
    %0 = arith.cmpi eq, %arg1, %c0_i32 : i32
    %c0_i32_0 = arith.constant 0 : i32
    %1 = arith.cmpi eq, %arg2, %c0_i32_0 : i32
    %2 = arith.andi %0, %1 : i1
    %3 = arith.extui %2 : i1 to i32
    %c0_i32_1 = arith.constant 0 : i32
    %4 = arith.cmpi ne, %3, %c0_i32_1 : i32
    scf.if %4 {
      %cst_35 = arith.constant 0.000000e+00 : f32
      %39 = vector.broadcast %cst_35 : f32 to vector<4x1xf32>
      %c0_36 = arith.constant 0 : index
      %c0_37 = arith.constant 0 : index
      %c0_38 = arith.constant 0 : index
      %40 = vector.load %arg4[%c0_36, %c0_37, %c0_38] : memref<1x4x1xf32, #tpu.memory_space<vmem>>, vector<1x4x1xf32>
      %41 = vector.shape_cast %40 : vector<1x4x1xf32> to vector<4x1xf32>
      %42 = vector.shape_cast %39 : vector<4x1xf32> to vector<1x4x1xf32>
      tpu.vector_store %arg4[%c0_36, %c0_37, %c0_38], %42 {strides = array<i32>} : memref<1x4x1xf32, #tpu.memory_space<vmem>>, vector<1x4x1xf32>,
      %cst_39 = arith.constant 0.000000e+00 : f32
      %43 = vector.broadcast %cst_39 : f32 to vector<4x4xf32>
      %c0_40 = arith.constant 0 : index
      %c0_41 = arith.constant 0 : index
      %c0_42 = arith.constant 0 : index
      %44 = vector.load %arg5[%c0_40, %c0_41, %c0_42] : memref<1x4x4xf32, #tpu.memory_space<vmem>>, vector<1x4x4xf32>
      %45 = vector.shape_cast %44 : vector<1x4x4xf32> to vector<4x4xf32>
      %46 = vector.shape_cast %43 : vector<4x4xf32> to vector<1x4x4xf32>
      tpu.vector_store %arg5[%c0_40, %c0_41, %c0_42], %46 {strides = array<i32>} : memref<1x4x4xf32, #tpu.memory_space<vmem>>, vector<1x4x4xf32>,
    } else {
    }
    %c0 = arith.constant 0 : index
    %c0_2 = arith.constant 0 : index
    %c0_3 = arith.constant 0 : index
    %5 = vector.load %arg3[%c0, %c0_2, %c0_3] : memref<2x4x256xf32, #tpu.memory_space<vmem>>, vector<1x4x256xf32>
    %6 = vector.shape_cast %5 : vector<1x4x256xf32> to vector<4x256xf32>
    %cst = arith.constant 1.000000e+00 : f32
    %7 = vector.broadcast %cst : f32 to vector<256x1xf32>
    %c0_4 = arith.constant 0 : index
    %c0_5 = arith.constant 0 : index
    %c0_6 = arith.constant 0 : index
    %8 = vector.load %arg4[%c0_4, %c0_5, %c0_6] : memref<1x4x1xf32, #tpu.memory_space<vmem>>, vector<1x4x1xf32>
    %9 = vector.shape_cast %8 : vector<1x4x1xf32> to vector<4x1xf32>
    %cst_7 = arith.constant dense<0.000000e+00> : vector<4x1xf32>
    %10 = tpu.matmul %6, %7, %cst_7 {dimension_numbers = #tpu.dot_dimension_numbers<[1], [0], [0], [1], [0, 0, 1, 1], [], []>} : vector<4x256xf32>, vector<256x1xf32>, vector<4x1xf32> -> vector<4x1xf32>
    %11 = arith.addf %9, %10 : vector<4x1xf32>
    %c0_8 = arith.constant 0 : index
    %c0_9 = arith.constant 0 : index
    %c0_10 = arith.constant 0 : index
    %12 = vector.load %arg4[%c0_8, %c0_9, %c0_10] : memref<1x4x1xf32, #tpu.memory_space<vmem>>, vector<1x4x1xf32>
    %13 = vector.shape_cast %12 : vector<1x4x1xf32> to vector<4x1xf32>
    %14 = vector.shape_cast %11 : vector<4x1xf32> to vector<1x4x1xf32>
    tpu.vector_store %arg4[%c0_8, %c0_9, %c0_10], %14 {strides = array<i32>} : memref<1x4x1xf32, #tpu.memory_space<vmem>>, vector<1x4x1xf32>,
    %c0_11 = arith.constant 0 : index
    %c0_12 = arith.constant 0 : index
    %c0_13 = arith.constant 0 : index
    %15 = vector.load %arg5[%c0_11, %c0_12, %c0_13] : memref<1x4x4xf32, #tpu.memory_space<vmem>>, vector<1x4x4xf32>
    %16 = vector.shape_cast %15 : vector<1x4x4xf32> to vector<4x4xf32>
    %cst_14 = arith.constant dense<0.000000e+00> : vector<4x4xf32>
    %17 = tpu.matmul %6, %6, %cst_14 {dimension_numbers = #tpu.dot_dimension_numbers<[1], [1], [0], [0], [0, 0, 1, 0], [], []>} : vector<4x256xf32>, vector<4x256xf32>, vector<4x4xf32> -> vector<4x4xf32>
    %18 = arith.addf %16, %17 : vector<4x4xf32>
    %c0_15 = arith.constant 0 : index
    %c0_16 = arith.constant 0 : index
    %c0_17 = arith.constant 0 : index
    %19 = vector.load %arg5[%c0_15, %c0_16, %c0_17] : memref<1x4x4xf32, #tpu.memory_space<vmem>>, vector<1x4x4xf32>
    %20 = vector.shape_cast %19 : vector<1x4x4xf32> to vector<4x4xf32>
    %21 = vector.shape_cast %18 : vector<4x4xf32> to vector<1x4x4xf32>
    tpu.vector_store %arg5[%c0_15, %c0_16, %c0_17], %21 {strides = array<i32>} : memref<1x4x4xf32, #tpu.memory_space<vmem>>, vector<1x4x4xf32>,
    %c1 = arith.constant 1 : index
    %c0_18 = arith.constant 0 : index
    %c0_19 = arith.constant 0 : index
    %22 = vector.load %arg3[%c1, %c0_18, %c0_19] : memref<2x4x256xf32, #tpu.memory_space<vmem>>, vector<1x4x256xf32>
    %23 = vector.shape_cast %22 : vector<1x4x256xf32> to vector<4x256xf32>
    %cst_20 = arith.constant 1.000000e+00 : f32
    %24 = vector.broadcast %cst_20 : f32 to vector<256x1xf32>
    %c0_21 = arith.constant 0 : index
    %c0_22 = arith.constant 0 : index
    %c0_23 = arith.constant 0 : index
    %25 = vector.load %arg4[%c0_21, %c0_22, %c0_23] : memref<1x4x1xf32, #tpu.memory_space<vmem>>, vector<1x4x1xf32>
    %26 = vector.shape_cast %25 : vector<1x4x1xf32> to vector<4x1xf32>
    %cst_24 = arith.constant dense<0.000000e+00> : vector<4x1xf32>
    %27 = tpu.matmul %23, %24, %cst_24 {dimension_numbers = #tpu.dot_dimension_numbers<[1], [0], [0], [1], [0, 0, 1, 1], [], []>} : vector<4x256xf32>, vector<256x1xf32>, vector<4x1xf32> -> vector<4x1xf32>
    %28 = arith.addf %26, %27 : vector<4x1xf32>
    %c0_25 = arith.constant 0 : index
    %c0_26 = arith.constant 0 : index
    %c0_27 = arith.constant 0 : index
    %29 = vector.load %arg4[%c0_25, %c0_26, %c0_27] : memref<1x4x1xf32, #tpu.memory_space<vmem>>, vector<1x4x1xf32>
    %30 = vector.shape_cast %29 : vector<1x4x1xf32> to vector<4x1xf32>
    %31 = vector.shape_cast %28 : vector<4x1xf32> to vector<1x4x1xf32>
    tpu.vector_store %arg4[%c0_25, %c0_26, %c0_27], %31 {strides = array<i32>} : memref<1x4x1xf32, #tpu.memory_space<vmem>>, vector<1x4x1xf32>,
    %c0_28 = arith.constant 0 : index
    %c0_29 = arith.constant 0 : index
    %c0_30 = arith.constant 0 : index
    %32 = vector.load %arg5[%c0_28, %c0_29, %c0_30] : memref<1x4x4xf32, #tpu.memory_space<vmem>>, vector<1x4x4xf32>
    %33 = vector.shape_cast %32 : vector<1x4x4xf32> to vector<4x4xf32>
    %cst_31 = arith.constant dense<0.000000e+00> : vector<4x4xf32>
    %34 = tpu.matmul %23, %23, %cst_31 {dimension_numbers = #tpu.dot_dimension_numbers<[1], [1], [0], [0], [0, 0, 1, 0], [], []>} : vector<4x256xf32>, vector<4x256xf32>, vector<4x4xf32> -> vector<4x4xf32>
    %35 = arith.addf %33, %34 : vector<4x4xf32>
    %c0_32 = arith.constant 0 : index
    %c0_33 = arith.constant 0 : index
    %c0_34 = arith.constant 0 : index
    %36 = vector.load %arg5[%c0_32, %c0_33, %c0_34] : memref<1x4x4xf32, #tpu.memory_space<vmem>>, vector<1x4x4xf32>
    %37 = vector.shape_cast %36 : vector<1x4x4xf32> to vector<4x4xf32>
    %38 = vector.shape_cast %35 : vector<4x4xf32> to vector<1x4x4xf32>
    tpu.vector_store %arg5[%c0_32, %c0_33, %c0_34], %38 {strides = array<i32>} : memref<1x4x4xf32, #tpu.memory_space<vmem>>, vector<1x4x4xf32>,
    return
  }
  func.func @transform_0(%arg0: i32, %arg1: i32, %arg2: i32) -> (i32, i32, i32) {
    %c0_i32 = arith.constant 0 : i32
    %c0_i32_0 = arith.constant 0 : i32
    return %arg1, %c0_i32, %arg2 : i32, i32, i32
  }
  func.func @transform_1(%arg0: i32, %arg1: i32, %arg2: i32) -> (i32, i32, i32) {
    %c0_i32 = arith.constant 0 : i32
    %c0_i32_0 = arith.constant 0 : i32
    %c0_i32_1 = arith.constant 0 : i32
    return %arg0, %c0_i32, %c0_i32_0 : i32, i32, i32
  }
  func.func @transform_2(%arg0: i32, %arg1: i32, %arg2: i32) -> (i32, i32, i32) {
    %c0_i32 = arith.constant 0 : i32
    %c0_i32_0 = arith.constant 0 : i32
    %c0_i32_1 = arith.constant 0 : i32
    return %arg0, %c0_i32, %c0_i32_0 : i32, i32, i32
  }
}

</mosaic_0001>

<bundles_post_ra>
// kernel: tpu_custom_call.1
= control target key start
LH: loop header
LB: loop body
LE: loop exit
PB: predicated region body
PF: predicated region fallthrough
CT: control target
= control target key end

     0   :  { %8 = vsyncpa [#allocation3], 0  ;;  %s581_s0 = inlined_call_operand.hbm [shape: f32[2,4,256], index: 0, kind: input, shape index: {}]   ;;  %s582_s1 = inlined_call_operand.vmem [shape: f32[1,4,1], index: 1, kind: output, shape index: {0}]   ;;  %s583_s2 = inlined_call_operand.hbm [shape: f32[1,4,4], index: 2, kind: output, shape index: {1}]  }
   0x1   :  { %9 = vsyncpa [#allocation4], 0  ;;  %s515_s9 = smov [#allocation2]   ;;  %s467_s13 = scalar_lea.hbm %s581_s0, 256 }
   0x2   :  { %s15_s10 = sshll.u32 %s515_s9, 4  ;;  %p468_p0 = scmp.ne.s32.totalorder %s581_s0, %s467_s13  ;;  %s16_s10 = int_to_ptr.vmem [resolvable:$true] %s15_s10 }
   0x3   :  { %p471_p1 = scmp.lt.u32.totalorder %s467_s13, %s581_s0 }
   0x5   :  { %p473_p2 = pnand %p471_p1, %p468_p0 }
   0x7   :  { %476 = shalt.err (!%p473_p2)
}
   0x8   :  { %s477_s18 = scalar_lea.vmem %s16_s10, 256  ;;  %p482_p4 = scmp.lt.s32.totalorder %s16_s10, %s16_s10 }
   0x9   :  { %p478_p3 = scmp.ne.s32.totalorder %s16_s10, %s477_s18  ;;  %p483_p5 = scmp.lt.s32.totalorder %s477_s18, %s477_s18 }
   0xb   :  { %p484_p6 = por %p483_p5, %p482_p4 }
   0xd   :  { %p485_p7 = pnand %p484_p6, %p478_p3 }
   0xf   :  { %488 = shalt.err (!%p485_p7)
}
  0x10   :  { %s516_s19 = smov 128   ;;  %s517_s20 = smov 8  }
  0x11   :  { %21 = dma.hbm_to_vmem [thread:$0]  %s581_s0, 256, %s16_s10, [#allocation3], %s516_s19, %s516_s19, %s517_s20  }
  0x12   :  { %511 = dma.done.wait [#allocation3], 256  }
  0x13   :  { %512 = vsyncadd [#allocation3], 4294967040  ;;  %vm33_vm0 = vcmask 27648   ;;  %v518_v0 = vmov 1.0|1.0   ;;  %v519_v1 = vmov 0.0  }
  0x14   :  { %427 = vmatprep.subr.bf16.mxu0 %v518_v0  ;;  %34 = vst.msk [vmem:[#allocation5] sm:$0xf] %vm33_vm0, %v519_v1  ;;  %v35_v2 = vld [vmem:[#allocation2] sm:$0xff]  ;;  %v188_v4 = vld [vmem:[#allocation2 + $0x8] sm:$0xff]  ;;  %vm31_vm1 = vcmask 3072   ;;  %s520_s28 = smov [#allocation5]  }
  0x15   :  { %428 = vmatpush3.bf16.msra.mxu0 %v518_v0  ;;  %v38_v3 = vcombine.high %v35_v2, %v35_v2  ;;  %v191_v5 = vcombine.high %v188_v4, %v188_v4  ;;  %32 = vst.msk [vmem:[%s582_s1] sm:$0xf] %vm31_vm1, %v519_v1  ;;  %s346_s29 = sshll.u32 %s520_s28, 4  ;;  %s347_s29 = int_to_ptr.vmem [resolvable:$true] %s346_s29 }
  0x16   :  { %429 = vmatprep.subr.bf16.mxu0 %v518_v0  ;;  %s489_s30 = scalar_lea.vmem %s347_s29, 64  ;;  %p494_p9 = scmp.lt.s32.totalorder %s347_s29, %s347_s29 }
  0x17   :  { %114 = vmatprep.subr.mxu1 %v38_v3  ;;  %178 = vmatprep.mubr.f32.mxu1 %v38_v3  ;;  %p490_p8 = scmp.ne.s32.totalorder %s347_s29, %s489_s30  ;;  %p495_p10 = scmp.lt.s32.totalorder %s489_s30, %s489_s30 }
  0x18   :  { %115 = vmatpush1.xpose.msra.mxu1 %v35_v2  ;;  %104 = vmatprep.mubr.f32.mxu0 %v38_v3 }
  0x19   :  { %430 = vmatpush3.bf16.msra.mxu0 %v518_v0  ;;  %443 = vmatprep.subr.bf16.mxu1 %v518_v0  ;;  %p496_p11 = por %p495_p10, %p494_p9 }
  0x1a   :  { %431 = vmatprep.subr.bf16.mxu0 %v518_v0 }
  0x1b   :  { %179 = vmatmul.mubr.f32.vlgmr.msra.gmra.mrb[0].mxu1 %v35_v2  ;;  %v113_v6 = vld [vmem:[#allocation5] sm:$0xf]  ;;  %p497_p12 = pnand %p496_p11, %p490_p8 }
  0x1c   :  { %444 = vmatpush3.bf16.msra.mxu1 %v518_v0  ;;  %257 = vmatprep.mubr.f32.mxu1 %v191_v5  ;;  %v36_v11 = vld [vmem:[%s582_s1] sm:$0xf] }
  0x1d   :  { %432 = vmatpush3.bf16.msra.mxu0 %v518_v0  ;;  %445 = vmatprep.subr.bf16.mxu1 %v518_v0 }
  0x1e   :  { %433 = vmatprep.subr.bf16.mxu0 %v518_v0 }
  0x20   :  { %446 = vmatpush3.bf16.msra.mxu1 %v518_v0 }
  0x21   :  { %434 = vmatpush3.bf16.msra.mxu0 %v518_v0  ;;  %447 = vmatprep.subr.bf16.mxu1 %v518_v0 }
  0x22   :  { %435 = vmatprep.subr.bf16.mxu0 %v518_v0 }
  0x24   :  { %448 = vmatpush3.bf16.msra.mxu1 %v518_v0 }
  0x25   :  { %436 = vmatpush3.bf16.msra.mxu0 %v518_v0  ;;  %449 = vmatprep.subr.bf16.mxu1 %v518_v0 }
  0x26   :  { %437 = vmatprep.subr.bf16.mxu0 %v518_v0 }
  0x28   :  { %450 = vmatpush3.bf16.msra.mxu1 %v518_v0 }
  0x29   :  { %438 = vmatpush3.bf16.msra.mxu0 %v518_v0  ;;  %451 = vmatprep.subr.bf16.mxu1 %v518_v0 }
  0x2a   :  { %439 = vmatprep.subr.bf16.mxu0 %v518_v0 }
  0x2c   :  { %452 = vmatpush3.bf16.msra.mxu1 %v518_v0 }
  0x2d   :  { %440 = vmatpush3.bf16.msra.mxu0 %v518_v0  ;;  %453 = vmatprep.subr.bf16.mxu1 %v518_v0 }
  0x2e   :  { %441 = vmatprep.subr.bf16.mxu0 %v518_v0 }
  0x30   :  { %454 = vmatpush3.bf16.msra.mxu1 %v518_v0 }
  0x31   :  { %442 = vmatpush3.bf16.msra.mxu0 %v518_v0  ;;  %455 = vmatprep.subr.bf16.mxu1 %v518_v0 }
  0x32   :  { %266 = vmatprep.subr.mxu0 %v191_v5 }
  0x34   :  { %105 = vmatmul.mubr.f32.vlgmr.msra.gmra.mrb[0].mxu0 %v35_v2  ;;  %456 = vmatpush3.bf16.msra.mxu1 %v518_v0 }
  0x35   :  { %330 = vmatprep.mubr.f32.mxu0 %v191_v5  ;;  %457 = vmatprep.subr.bf16.mxu1 %v518_v0 }
  0x38   :  { %458 = vmatpush3.bf16.msra.mxu1 %v518_v0 }
  0x3a   :  { %267 = vmatpush1.xpose.msra.mxu0 %v188_v4 }
  0x3b   :  { %258 = vmatmul.mubr.f32.vlgmr.msra.gmra.mrb[2].mxu1 %v188_v4 }
  0x3d   :  { %331 = vmatmul.mubr.f32.vlgmr.msra.gmra.mrb[2].mxu0 %v188_v4 }
  0xee   :  { %v180_v7 = vpop.f32.mrb[0].mxu1 }
  0xef   :  { %v184_v8 = vadd.f32 %v180_v7, %v113_v6  ;;  %v182_v9 = vpop.f32.mrb[1].mxu1 }
  0xf1   :  { %186 = vst.msk [vmem:[#allocation5] sm:$0xf] %vm33_vm0, %v184_v8 }
  0xf8   :  { %v265_v15 = vld [vmem:[#allocation5] sm:$0xf] }
 0x107   :  { %v389_v10 = vpop.f32.mrb[0].mxu0 }
 0x108   :  { %v390_v12 = vpop.f32.mrb[1].mxu0 }
 0x109   :  { %v391_v13 = vadd.f32 %v390_v12, %v389_v10 }
 0x10b   :  { %v110_v14 = vadd.f32 %v391_v13, %v36_v11 }
 0x10d   :  { %112 = vst.msk [vmem:[%s582_s1] sm:$0xf] %vm31_vm1, %v110_v14 }
 0x10e   :  { %v424_v19 = vpop.f32.mrb[2].mxu1 }
 0x110   :  { %v332_v16 = vpop.f32.mrb[2].mxu0 }
 0x111   :  { %v336_v17 = vadd.f32 %v332_v16, %v265_v15  ;;  %v334_v18 = vpop.f32.mrb[3].mxu0 }
 0x113   :  { %337 = vst.msk [vmem:[#allocation5] sm:$0xf] %vm33_vm0, %v336_v17 }
 0x114   :  { %500 = shalt.err (!%p497_p12)
}
 0x115   :  { %s501_s5 = scalar_lea.hbm %s583_s2, 64 }
 0x116   :  { %p502_p13 = scmp.ne.s32.totalorder %s583_s2, %s501_s5  ;;  %p505_p0 = scmp.lt.u32.totalorder %s501_s5, %s583_s2 }
 0x118   :  { %p507_p1 = pnand %p505_p0, %p502_p13 }
 0x11a   :  { %510 = shalt.err (!%p507_p1)
}
 0x11b   :  { %349 = dma.vmem_to_hbm [thread:$0]  %s347_s29, 64, %s583_s2, [#allocation4]   ;;  %v189_v20 = vld [vmem:[%s582_s1] sm:$0xf]  ;;  %v425_v21 = vpop.f32.mrb[3].mxu1 }
 0x11c   :  { %v426_v22 = vadd.f32 %v425_v21, %v424_v19 }
 0x11e   :  { %v263_v23 = vadd.f32 %v426_v22, %v189_v20 }
 0x120   :  { %264 = vst.msk [vmem:[%s582_s1] sm:$0xf] %vm31_vm1, %v263_v23 }
 0x121   :  { %513 = dma.done.wait [#allocation4], 64  }
 0x122   :  { %514 = vsyncadd [#allocation4], 4294967232 }
 0x123   :  { %355 = vsyncpa [#allocation3], 1 }
 0x124   :  { %356 = vsyncpa [#allocation4], 1 }

</bundles_post_ra>
